<compile_context>
chip_gen: v5e
topology: v5e:2x2
jax: 0.10.0
libtpu: 0.0.40
codegen_flags: <defaults>
</compile_context>

<pallas_src>
import jax
import jax.numpy as jnp
from jax.experimental import pallas as pl
from jax.experimental.pallas import tpu as pltpu


# -----------------------------------------------------------------------------
# Pallas kernel.
# One grid step = one (batch b, spatial tile m): a (C, tm) slab of pixels.
#   s   = relu(Wx@x + Wg@g + (bx+bg))            # MXU, folded biases merged
#   psi = sigmoid(sum_c(wp[c] * s[c, :]) + bp)   # VPU mul + sublane reduce + EUP
#   out = x * psi                                # VPU, psi broadcast over C
# The psi projection has a single output channel, so a (1,C)@(C,tm) MXU matmul
# would be pure drain overhead; the multiply+reduce keeps it off the MXU.
# -----------------------------------------------------------------------------
def up_attention_kernel(x_ref, g_ref, wx_ref, wg_ref, b_ref, wp_ref, bp_ref,
                        o_ref):
    # 1x1 convs (+ folded BN) == channel matmuls on the MXU.
    # TODO(synk): for large C on v5e (compute-bound), casting operands to bf16
    # (keeping f32 accumulation) and fusing the two dots into one K=2C pass
    # would raise MXU throughput; irrelevant while memory-bound.
    s = jnp.dot(wx_ref[...], x_ref[...].astype(jnp.float32),
                preferred_element_type=jnp.float32)
    s = s + jnp.dot(wg_ref[...], g_ref[...].astype(jnp.float32),
                    preferred_element_type=jnp.float32)
    s = jnp.maximum(s + b_ref[...], 0.0)                              # (C, tm)

    # psi: single-output-channel 1x1 conv (+ folded BN), then sigmoid.
    p = jnp.sum(s * wp_ref[...], axis=0, keepdims=True) + bp_ref[...]  # (1, tm)
    psi = jax.nn.sigmoid(p)

    # Re-load x for the final product so an up-cast f32 (C, tm) copy of it is
    # not kept live across the matmuls (lower vreg/VMEM pressure when the I/O
    # dtype is bf16).
    o_ref[...] = (x_ref[...].astype(jnp.float32) * psi).astype(o_ref.dtype)


# -----------------------------------------------------------------------------
# Tiling / VMEM helpers
# -----------------------------------------------------------------------------
def _round_up(v, m):
    return ((v + m - 1) // m) * m


def _vmem_cap_bytes():
    """Usable VMEM budget for this chip generation (with compiler headroom)."""
    try:
        cap = int(pltpu.get_tpu_info().vmem_capacity_bytes)
    except Exception:
        cap = 64 * 2**20          # conservative default (v7x per-TensorCore)
    # Leave ~12 MiB for compiler internal scratch; never below 16 MiB.
    return max(16 * 2**20, cap - 12 * 2**20)


def _choose_tile(S, C, itemsize, B, vmem_cap, target_bytes=2 << 20):
    """Pick the spatial tile width tm (multiple of 128 lanes, or full S).

    Sized by bytes: the per-step DMA payload for x/g/out is ~target_bytes so
    the ~0.35 us fixed per-step overhead is amortized even at small C, capped
    so the double-buffered I/O tiles stay well inside the VMEM budget.
    """
    if S <= 128:
        return S, 1                       # single full-extent block
    tm = target_bytes // max(1, 3 * C * itemsize)
    tm_cap = (vmem_cap // 2) // max(1, 3 * 2 * C * itemsize)
    tm = min(tm, tm_cap, (S // 128) * 128)
    tm = max(128, (tm // 128) * 128)
    n_m = -(-S // tm)
    # v7x: for tiny grids keep the parallel step count even so both
    # TensorCores get equal work (no-op on single-core v5e/v6e).
    if (B * n_m) % 2 == 1 and B * n_m < 16:
        for n_try in range(n_m + 1, n_m + 5):
            tm_try = max(128, _round_up(-(-S // n_try), 128))
            n_new = -(-S // tm_try)
            if (B * n_new) % 2 == 0:
                tm, n_m = tm_try, n_new
                break
    return tm, n_m


# -----------------------------------------------------------------------------
# pallas_call wrapper
# -----------------------------------------------------------------------------
def _pallas_up_attention(x3, g3, wx, wg, b, wp, bp, *, tm, vmem_limit,
                         weight_buffers):
    B, C, S = x3.shape
    n_m = -(-S // tm)

    pix_spec = pl.BlockSpec((None, C, tm), lambda bi, mi: (bi, 0, mi))
    wkw = ({} if weight_buffers is None
           else dict(pipeline_mode=pl.Buffered(weight_buffers)))
    w_spec = lambda shape: pl.BlockSpec(shape, lambda bi, mi: (0, 0), **wkw)

    return pl.pallas_call(
        up_attention_kernel,
        out_shape=jax.ShapeDtypeStruct((B, C, S), x3.dtype),
        grid_spec=pltpu.PrefetchScalarGridSpec(
            num_scalar_prefetch=0,
            grid=(B, n_m),
            in_specs=[
                pix_spec,           # x  (B, C, S) -> kernel sees (C, tm)
                pix_spec,           # g
                w_spec((C, C)),     # Wx (BN folded)
                w_spec((C, C)),     # Wg (BN folded)
                w_spec((C, 1)),     # bx + bg (BN folded, merged)
                w_spec((C, 1)),     # Wpsi column (BN folded)
                w_spec((1, 1)),     # bpsi (BN folded)
            ],
            out_specs=pix_spec,
        ),
        compiler_params=pltpu.CompilerParams(
            dimension_semantics=("parallel", "parallel"),
            vmem_limit_bytes=vmem_limit),
    )(x3, g3, wx, wg, b, wp, bp)


def up_attention_pallas(x3, g3, wx, wg, b, wp, bp):
    """x3, g3: (B, C, S).  Returns (B, C, S) in x3.dtype (partial last tile OK)."""
    B, C, S = x3.shape
    itemsize = x3.dtype.itemsize
    cap = _vmem_cap_bytes()
    tm, _ = _choose_tile(S, C, itemsize, B, cap)

    # VMEM estimate: x/g/out tiles double-buffered by the pipeline; weights
    # accounted with two buffers (conservative even when Buffered(1) lands).
    # TODO(synk): for C >~ 1024 on v7x, tile the output channels or cast the
    # folded Wx/Wg to bf16 so the resident weights fit 64 MiB.
    io_bytes = 3 * 2 * C * tm * itemsize
    w_bytes = 2 * 4 * (2 * C * C + 2 * C + 1)
    vmem_limit = int(min(max(2 * (io_bytes + w_bytes), 16 * 2**20), cap))

    try:
        # Constant-index weights are DMA'd once; drop their dead second buffer.
        return _pallas_up_attention(x3, g3, wx, wg, b, wp, bp, tm=tm,
                                    vmem_limit=vmem_limit, weight_buffers=1)
    except Exception:
        # TODO(synk): pipeline_mode=pl.Buffered rejected by this jax version;
        # fall back to default double-buffered weight tiles.
        return _pallas_up_attention(x3, g3, wx, wg, b, wp, bp, tm=tm,
                                    vmem_limit=vmem_limit, weight_buffers=None)


# -----------------------------------------------------------------------------
# Parameter setup (deterministic) + BN folding (plain-JAX glue)
# -----------------------------------------------------------------------------
def make_params(up_channels, key):
    C = up_channels
    k = jax.random.split(key, 6)
    # PyTorch 1x1 conv weight shape (C_out, C_in, 1, 1) -> (C_out, C_in)
    wx = jax.random.normal(k[0], (C, C), jnp.float32) * 0.1
    bx = jax.random.normal(k[1], (C,), jnp.float32) * 0.1
    wg = jax.random.normal(k[2], (C, C), jnp.float32) * 0.1
    bg = jax.random.normal(k[3], (C,), jnp.float32) * 0.1
    wp = jax.random.normal(k[4], (1, C), jnp.float32) * 0.1
    bp = jax.random.normal(k[5], (1,), jnp.float32) * 0.1
    # BatchNorm params at deterministic init (eval mode)
    bn = lambda n: dict(gamma=jnp.ones((n,), jnp.float32),
                        beta=jnp.zeros((n,), jnp.float32),
                        mean=jnp.zeros((n,), jnp.float32),
                        var=jnp.ones((n,), jnp.float32))
    return dict(wx=wx, bx=bx, bnx=bn(C),
                wg=wg, bg=bg, bng=bn(C),
                wp=wp, bp=bp, bnp=bn(1))


def fold_bn(w, b, bn, eps=1e-5):
    """Fold eval-mode BatchNorm into a 1x1 conv.  w: (C_out, C_in), b: (C_out,)."""
    a = bn["gamma"] / jnp.sqrt(bn["var"] + eps)           # (C_out,)
    w_f = w * a[:, None]                                  # scale output channels
    b_f = a * (b - bn["mean"]) + bn["beta"]
    return w_f, b_f


def up_attention_forward(x, g, params):
    """x, g: NCHW (B, C, H, W).  Returns NCHW in x.dtype (eval-mode BN folded).

    bf16 x/g halve HBM traffic (recommended for memory-bound shapes); the
    in-kernel accumulation, sigmoid and x*psi stay in f32 regardless.
    """
    B, C, H, W = x.shape
    S = H * W

    wx, bx = fold_bn(params["wx"], params["bx"], params["bnx"])   # (C, C), (C,)
    wg, bg = fold_bn(params["wg"], params["bg"], params["bng"])
    wp, bp = fold_bn(params["wp"], params["bp"], params["bnp"])   # (1, C), (1,)

    # Free reshape (no NCHW<->NHWC transpose, no jnp.pad HBM round trip: the
    # grid uses cdiv(S, tm) and Pallas masks the partial boundary block).
    x3 = x.reshape(B, C, S)
    g3 = g.reshape(B, C, S)

    out3 = up_attention_pallas(
        x3, g3,
        wx, wg,
        (bx + bg).reshape(C, 1),     # merged folded gate bias
        wp.reshape(C, 1),            # psi weight as a channel column
        bp.reshape(1, 1),            # folded psi bias
    )
    return out3.reshape(B, C, H, W)


def up_attention_reference(x, g, params, eps=1e-5):
    """Pure-JAX reference mirroring the PyTorch module (eval-mode BN)."""
    def conv_bn(inp, w, b, bn):
        y = jnp.einsum("bchw,oc->bohw", inp, w) + b[None, :, None, None]
        a = bn["gamma"] / jnp.sqrt(bn["var"] + eps)
        return a[None, :, None, None] * (y - bn["mean"][None, :, None, None]) \
               + bn["beta"][None, :, None, None]
    x1 = conv_bn(x, params["wx"], params["bx"], params["bnx"])
    g1 = conv_bn(g, params["wg"], params["bg"], params["bng"])
    s = jnp.maximum(g1 + x1, 0.0)
    psi = jax.nn.sigmoid(conv_bn(s, params["wp"], params["bp"], params["bnp"]))
    return x * psi


if __name__ == "__main__":
    key = jax.random.PRNGKey(0)
    kx, kg, kp = jax.random.split(key, 3)

    B, C, H, W = 2, 4, 16, 16          # S = H*W = 256 -> one 256-lane tile/batch
    x = jax.random.normal(kx, (B, C, H, W), jnp.float32)
    g = jax.random.normal(kg, (B, C, H, W), jnp.float32)
    params = make_params(C, kp)

    # f32 I/O (tight correctness check)
    out = jax.block_until_ready(up_attention_forward(x, g, params))
    ref = up_attention_reference(x, g, params)
    assert out.shape == (B, C, H, W)
    assert jnp.allclose(out, ref, atol=1e-5, rtol=1e-5), "f32 mismatch vs reference"

    # bf16 I/O path (halves HBM bytes on this memory-bound op); compute stays f32.
    x_bf = x.astype(jnp.bfloat16)
    g_bf = g.astype(jnp.bfloat16)
    out_bf = jax.block_until_ready(up_attention_forward(x_bf, g_bf, params))
    ref_bf = up_attention_reference(x_bf.astype(jnp.float32),
                                    g_bf.astype(jnp.float32), params)
    assert out_bf.dtype == jnp.bfloat16
    assert jnp.allclose(out_bf.astype(jnp.float32), ref_bf,
                        atol=2e-2, rtol=2e-2), "bf16 mismatch vs reference"

    print("KERNEL_OK")
</pallas_src>

<mosaic_0001>
module attributes {stable_mosaic.version = 11 : i64} {
  func.func @up_attention_kernel(%arg0: i32, %arg1: i32, %arg2: memref<1x4x256xf32, #tpu.memory_space<vmem>>, %arg3: memref<1x4x256xf32, #tpu.memory_space<vmem>>, %arg4: memref<4x4xf32, #tpu.memory_space<vmem>>, %arg5: memref<4x4xf32, #tpu.memory_space<vmem>>, %arg6: memref<4x1xf32, #tpu.memory_space<vmem>>, %arg7: memref<4x1xf32, #tpu.memory_space<vmem>>, %arg8: memref<1x1xf32, #tpu.memory_space<vmem>>, %arg9: memref<1x4x256xf32, #tpu.memory_space<vmem>>) attributes {dimension_semantics = [#tpu.dimension_semantics<parallel>, #tpu.dimension_semantics<parallel>], iteration_bounds = array<i64: 2, 1>, scalar_prefetch = 0 : i64, scratch_operands = 0 : i64, tpu.core_type = #tpu.core_type<tc>, window_params = [{transform_indices = @transform_0, window_bounds = array<i64: 1, 4, 256>}, {transform_indices = @transform_1, window_bounds = array<i64: 1, 4, 256>}, {pipeline_mode = #tpu.pipeline_mode<synchronous>, transform_indices = @transform_2, window_bounds = array<i64: 4, 4>}, {pipeline_mode = #tpu.pipeline_mode<synchronous>, transform_indices = @transform_3, window_bounds = array<i64: 4, 4>}, {pipeline_mode = #tpu.pipeline_mode<synchronous>, transform_indices = @transform_4, window_bounds = array<i64: 4, 1>}, {pipeline_mode = #tpu.pipeline_mode<synchronous>, transform_indices = @transform_5, window_bounds = array<i64: 4, 1>}, {pipeline_mode = #tpu.pipeline_mode<synchronous>, transform_indices = @transform_6, window_bounds = array<i64: 1, 1>}, {transform_indices = @transform_7, window_bounds = array<i64: 1, 4, 256>}]} {
    %c0 = arith.constant 0 : index
    %c0_0 = arith.constant 0 : index
    %0 = vector.load %arg4[%c0, %c0_0] : memref<4x4xf32, #tpu.memory_space<vmem>>, vector<4x4xf32>
    %c0_1 = arith.constant 0 : index
    %c0_2 = arith.constant 0 : index
    %c0_3 = arith.constant 0 : index
    %1 = vector.load %arg2[%c0_1, %c0_2, %c0_3] : memref<1x4x256xf32, #tpu.memory_space<vmem>>, vector<1x4x256xf32>
    %2 = vector.shape_cast %1 : vector<1x4x256xf32> to vector<4x256xf32>
    %cst = arith.constant dense<0.000000e+00> : vector<4x256xf32>
    %3 = tpu.matmul %0, %2, %cst {dimension_numbers = #tpu.dot_dimension_numbers<[1], [0], [0], [1], [0, 0, 1, 1], [], []>} : vector<4x4xf32>, vector<4x256xf32>, vector<4x256xf32> -> vector<4x256xf32>
    %c0_4 = arith.constant 0 : index
    %c0_5 = arith.constant 0 : index
    %4 = vector.load %arg5[%c0_4, %c0_5] : memref<4x4xf32, #tpu.memory_space<vmem>>, vector<4x4xf32>
    %c0_6 = arith.constant 0 : index
    %c0_7 = arith.constant 0 : index
    %c0_8 = arith.constant 0 : index
    %5 = vector.load %arg3[%c0_6, %c0_7, %c0_8] : memref<1x4x256xf32, #tpu.memory_space<vmem>>, vector<1x4x256xf32>
    %6 = vector.shape_cast %5 : vector<1x4x256xf32> to vector<4x256xf32>
    %cst_9 = arith.constant dense<0.000000e+00> : vector<4x256xf32>
    %7 = tpu.matmul %4, %6, %cst_9 {dimension_numbers = #tpu.dot_dimension_numbers<[1], [0], [0], [1], [0, 0, 1, 1], [], []>} : vector<4x4xf32>, vector<4x256xf32>, vector<4x256xf32> -> vector<4x256xf32>
    %8 = arith.addf %3, %7 : vector<4x256xf32>
    %c0_10 = arith.constant 0 : index
    %c0_11 = arith.constant 0 : index
    %9 = vector.load %arg6[%c0_10, %c0_11] : memref<4x1xf32, #tpu.memory_space<vmem>>, vector<4x1xf32>
    %10 = vector.broadcast %9 : vector<4x1xf32> to vector<4x256xf32>
    %11 = arith.addf %8, %10 : vector<4x256xf32>
    %cst_12 = arith.constant 0.000000e+00 : f32
    %12 = vector.broadcast %cst_12 : f32 to vector<4x256xf32>
    %13 = arith.maximumf %11, %12 : vector<4x256xf32>
    %c0_13 = arith.constant 0 : index
    %c0_14 = arith.constant 0 : index
    %14 = vector.load %arg7[%c0_13, %c0_14] : memref<4x1xf32, #tpu.memory_space<vmem>>, vector<4x1xf32>
    %15 = vector.broadcast %14 : vector<4x1xf32> to vector<4x256xf32>
    %16 = arith.mulf %13, %15 : vector<4x256xf32>
    %cst_15 = arith.constant dense<0.000000e+00> : vector<256xf32>
    %17 = vector.multi_reduction <add>, %16, %cst_15 [0] : vector<4x256xf32> to vector<256xf32>
    %18 = vector.shape_cast %17 : vector<256xf32> to vector<1x256xf32>
    %c0_16 = arith.constant 0 : index
    %c0_17 = arith.constant 0 : index
    %19 = vector.load %arg8[%c0_16, %c0_17] : memref<1x1xf32, #tpu.memory_space<vmem>>, vector<1x1xf32>
    %20 = vector.broadcast %19 : vector<1x1xf32> to vector<1x256xf32>
    %21 = arith.addf %18, %20 : vector<1x256xf32>
    %22 = arith.negf %21 : vector<1x256xf32>
    %23 = math.exp %22 : vector<1x256xf32>
    %cst_18 = arith.constant 1.000000e+00 : f32
    %24 = vector.broadcast %cst_18 : f32 to vector<1x256xf32>
    %25 = arith.addf %24, %23 : vector<1x256xf32>
    %26 = arith.divf %24, %25 : vector<1x256xf32>
    %c0_19 = arith.constant 0 : index
    %c0_20 = arith.constant 0 : index
    %c0_21 = arith.constant 0 : index
    %27 = vector.load %arg2[%c0_19, %c0_20, %c0_21] : memref<1x4x256xf32, #tpu.memory_space<vmem>>, vector<1x4x256xf32>
    %28 = vector.shape_cast %27 : vector<1x4x256xf32> to vector<4x256xf32>
    %29 = vector.broadcast %26 : vector<1x256xf32> to vector<4x256xf32>
    %30 = arith.mulf %28, %29 : vector<4x256xf32>
    %c0_22 = arith.constant 0 : index
    %c0_23 = arith.constant 0 : index
    %c0_24 = arith.constant 0 : index
    %31 = vector.load %arg9[%c0_22, %c0_23, %c0_24] : memref<1x4x256xf32, #tpu.memory_space<vmem>>, vector<1x4x256xf32>
    %32 = vector.shape_cast %31 : vector<1x4x256xf32> to vector<4x256xf32>
    %33 = vector.shape_cast %30 : vector<4x256xf32> to vector<1x4x256xf32>
    tpu.vector_store %arg9[%c0_22, %c0_23, %c0_24], %33 {strides = array<i32>} : memref<1x4x256xf32, #tpu.memory_space<vmem>>, vector<1x4x256xf32>,
    return
  }
  func.func @transform_0(%arg0: i32, %arg1: i32) -> (i32, i32, i32) {
    %c0_i32 = arith.constant 0 : i32
    %c0_i32_0 = arith.constant 0 : i32
    return %arg0, %c0_i32, %arg1 : i32, i32, i32
  }
  func.func @transform_1(%arg0: i32, %arg1: i32) -> (i32, i32, i32) {
    %c0_i32 = arith.constant 0 : i32
    %c0_i32_0 = arith.constant 0 : i32
    return %arg0, %c0_i32, %arg1 : i32, i32, i32
  }
  func.func @transform_2(%arg0: i32, %arg1: i32) -> (i32, i32) {
    %c0_i32 = arith.constant 0 : i32
    %c0_i32_0 = arith.constant 0 : i32
    %c0_i32_1 = arith.constant 0 : i32
    return %c0_i32, %c0_i32_0 : i32, i32
  }
  func.func @transform_3(%arg0: i32, %arg1: i32) -> (i32, i32) {
    %c0_i32 = arith.constant 0 : i32
    %c0_i32_0 = arith.constant 0 : i32
    %c0_i32_1 = arith.constant 0 : i32
    return %c0_i32, %c0_i32_0 : i32, i32
  }
  func.func @transform_4(%arg0: i32, %arg1: i32) -> (i32, i32) {
    %c0_i32 = arith.constant 0 : i32
    %c0_i32_0 = arith.constant 0 : i32
    %c0_i32_1 = arith.constant 0 : i32
    return %c0_i32, %c0_i32_0 : i32, i32
  }
  func.func @transform_5(%arg0: i32, %arg1: i32) -> (i32, i32) {
    %c0_i32 = arith.constant 0 : i32
    %c0_i32_0 = arith.constant 0 : i32
    %c0_i32_1 = arith.constant 0 : i32
    return %c0_i32, %c0_i32_0 : i32, i32
  }
  func.func @transform_6(%arg0: i32, %arg1: i32) -> (i32, i32) {
    %c0_i32 = arith.constant 0 : i32
    %c0_i32_0 = arith.constant 0 : i32
    %c0_i32_1 = arith.constant 0 : i32
    return %c0_i32, %c0_i32_0 : i32, i32
  }
  func.func @transform_7(%arg0: i32, %arg1: i32) -> (i32, i32, i32) {
    %c0_i32 = arith.constant 0 : i32
    %c0_i32_0 = arith.constant 0 : i32
    return %arg0, %c0_i32, %arg1 : i32, i32, i32
  }
}

module attributes {stable_mosaic.version = 11 : i64} {
  func.func @up_attention_kernel(%arg0: i32, %arg1: i32, %arg2: memref<1x4x256xf32, #tpu.memory_space<vmem>>, %arg3: memref<1x4x256xf32, #tpu.memory_space<vmem>>, %arg4: memref<4x4xf32, #tpu.memory_space<vmem>>, %arg5: memref<4x4xf32, #tpu.memory_space<vmem>>, %arg6: memref<4x1xf32, #tpu.memory_space<vmem>>, %arg7: memref<4x1xf32, #tpu.memory_space<vmem>>, %arg8: memref<1x1xf32, #tpu.memory_space<vmem>>, %arg9: memref<1x4x256xf32, #tpu.memory_space<vmem>>) attributes {dimension_semantics = [#tpu.dimension_semantics<parallel>, #tpu.dimension_semantics<parallel>], iteration_bounds = array<i64: 2, 1>, scalar_prefetch = 0 : i64, scratch_operands = 0 : i64, tpu.core_type = #tpu.core_type<tc>, window_params = [{transform_indices = @transform_0, window_bounds = array<i64: 1, 4, 256>}, {transform_indices = @transform_1, window_bounds = array<i64: 1, 4, 256>}, {pipeline_mode = #tpu.pipeline_mode<synchronous>, transform_indices = @transform_2, window_bounds = array<i64: 4, 4>}, {pipeline_mode = #tpu.pipeline_mode<synchronous>, transform_indices = @transform_3, window_bounds = array<i64: 4, 4>}, {pipeline_mode = #tpu.pipeline_mode<synchronous>, transform_indices = @transform_4, window_bounds = array<i64: 4, 1>}, {pipeline_mode = #tpu.pipeline_mode<synchronous>, transform_indices = @transform_5, window_bounds = array<i64: 4, 1>}, {pipeline_mode = #tpu.pipeline_mode<synchronous>, transform_indices = @transform_6, window_bounds = array<i64: 1, 1>}, {transform_indices = @transform_7, window_bounds = array<i64: 1, 4, 256>}]} {
    %c0 = arith.constant 0 : index
    %c0_0 = arith.constant 0 : index
    %0 = vector.load %arg4[%c0, %c0_0] : memref<4x4xf32, #tpu.memory_space<vmem>>, vector<4x4xf32>
    %c0_1 = arith.constant 0 : index
    %c0_2 = arith.constant 0 : index
    %c0_3 = arith.constant 0 : index
    %1 = vector.load %arg2[%c0_1, %c0_2, %c0_3] : memref<1x4x256xf32, #tpu.memory_space<vmem>>, vector<1x4x256xf32>
    %2 = vector.shape_cast %1 : vector<1x4x256xf32> to vector<4x256xf32>
    %cst = arith.constant dense<0.000000e+00> : vector<4x256xf32>
    %3 = tpu.matmul %0, %2, %cst {dimension_numbers = #tpu.dot_dimension_numbers<[1], [0], [0], [1], [0, 0, 1, 1], [], []>} : vector<4x4xf32>, vector<4x256xf32>, vector<4x256xf32> -> vector<4x256xf32>
    %c0_4 = arith.constant 0 : index
    %c0_5 = arith.constant 0 : index
    %4 = vector.load %arg5[%c0_4, %c0_5] : memref<4x4xf32, #tpu.memory_space<vmem>>, vector<4x4xf32>
    %c0_6 = arith.constant 0 : index
    %c0_7 = arith.constant 0 : index
    %c0_8 = arith.constant 0 : index
    %5 = vector.load %arg3[%c0_6, %c0_7, %c0_8] : memref<1x4x256xf32, #tpu.memory_space<vmem>>, vector<1x4x256xf32>
    %6 = vector.shape_cast %5 : vector<1x4x256xf32> to vector<4x256xf32>
    %cst_9 = arith.constant dense<0.000000e+00> : vector<4x256xf32>
    %7 = tpu.matmul %4, %6, %cst_9 {dimension_numbers = #tpu.dot_dimension_numbers<[1], [0], [0], [1], [0, 0, 1, 1], [], []>} : vector<4x4xf32>, vector<4x256xf32>, vector<4x256xf32> -> vector<4x256xf32>
    %8 = arith.addf %3, %7 : vector<4x256xf32>
    %c0_10 = arith.constant 0 : index
    %c0_11 = arith.constant 0 : index
    %9 = vector.load %arg6[%c0_10, %c0_11] : memref<4x1xf32, #tpu.memory_space<vmem>>, vector<4x1xf32>
    %10 = vector.broadcast %9 : vector<4x1xf32> to vector<4x256xf32>
    %11 = arith.addf %8, %10 : vector<4x256xf32>
    %cst_12 = arith.constant 0.000000e+00 : f32
    %12 = vector.broadcast %cst_12 : f32 to vector<4x256xf32>
    %13 = arith.maximumf %11, %12 : vector<4x256xf32>
    %c0_13 = arith.constant 0 : index
    %c0_14 = arith.constant 0 : index
    %14 = vector.load %arg7[%c0_13, %c0_14] : memref<4x1xf32, #tpu.memory_space<vmem>>, vector<4x1xf32>
    %15 = vector.broadcast %14 : vector<4x1xf32> to vector<4x256xf32>
    %16 = arith.mulf %13, %15 : vector<4x256xf32>
    %cst_15 = arith.constant dense<0.000000e+00> : vector<256xf32>
    %17 = vector.multi_reduction <add>, %16, %cst_15 [0] : vector<4x256xf32> to vector<256xf32>
    %18 = vector.shape_cast %17 : vector<256xf32> to vector<1x256xf32>
    %c0_16 = arith.constant 0 : index
    %c0_17 = arith.constant 0 : index
    %19 = vector.load %arg8[%c0_16, %c0_17] : memref<1x1xf32, #tpu.memory_space<vmem>>, vector<1x1xf32>
    %20 = vector.broadcast %19 : vector<1x1xf32> to vector<1x256xf32>
    %21 = arith.addf %18, %20 : vector<1x256xf32>
    %22 = arith.negf %21 : vector<1x256xf32>
    %23 = math.exp %22 : vector<1x256xf32>
    %cst_18 = arith.constant 1.000000e+00 : f32
    %24 = vector.broadcast %cst_18 : f32 to vector<1x256xf32>
    %25 = arith.addf %24, %23 : vector<1x256xf32>
    %26 = arith.divf %24, %25 : vector<1x256xf32>
    %c0_19 = arith.constant 0 : index
    %c0_20 = arith.constant 0 : index
    %c0_21 = arith.constant 0 : index
    %27 = vector.load %arg2[%c0_19, %c0_20, %c0_21] : memref<1x4x256xf32, #tpu.memory_space<vmem>>, vector<1x4x256xf32>
    %28 = vector.shape_cast %27 : vector<1x4x256xf32> to vector<4x256xf32>
    %29 = vector.broadcast %26 : vector<1x256xf32> to vector<4x256xf32>
    %30 = arith.mulf %28, %29 : vector<4x256xf32>
    %c0_22 = arith.constant 0 : index
    %c0_23 = arith.constant 0 : index
    %c0_24 = arith.constant 0 : index
    %31 = vector.load %arg9[%c0_22, %c0_23, %c0_24] : memref<1x4x256xf32, #tpu.memory_space<vmem>>, vector<1x4x256xf32>
    %32 = vector.shape_cast %31 : vector<1x4x256xf32> to vector<4x256xf32>
    %33 = vector.shape_cast %30 : vector<4x256xf32> to vector<1x4x256xf32>
    tpu.vector_store %arg9[%c0_22, %c0_23, %c0_24], %33 {strides = array<i32>} : memref<1x4x256xf32, #tpu.memory_space<vmem>>, vector<1x4x256xf32>,
    return
  }
  func.func @transform_0(%arg0: i32, %arg1: i32) -> (i32, i32, i32) {
    %c0_i32 = arith.constant 0 : i32
    %c0_i32_0 = arith.constant 0 : i32
    return %arg0, %c0_i32, %arg1 : i32, i32, i32
  }
  func.func @transform_1(%arg0: i32, %arg1: i32) -> (i32, i32, i32) {
    %c0_i32 = arith.constant 0 : i32
    %c0_i32_0 = arith.constant 0 : i32
    return %arg0, %c0_i32, %arg1 : i32, i32, i32
  }
  func.func @transform_2(%arg0: i32, %arg1: i32) -> (i32, i32) {
    %c0_i32 = arith.constant 0 : i32
    %c0_i32_0 = arith.constant 0 : i32
    %c0_i32_1 = arith.constant 0 : i32
    return %c0_i32, %c0_i32_0 : i32, i32
  }
  func.func @transform_3(%arg0: i32, %arg1: i32) -> (i32, i32) {
    %c0_i32 = arith.constant 0 : i32
    %c0_i32_0 = arith.constant 0 : i32
    %c0_i32_1 = arith.constant 0 : i32
    return %c0_i32, %c0_i32_0 : i32, i32
  }
  func.func @transform_4(%arg0: i32, %arg1: i32) -> (i32, i32) {
    %c0_i32 = arith.constant 0 : i32
    %c0_i32_0 = arith.constant 0 : i32
    %c0_i32_1 = arith.constant 0 : i32
    return %c0_i32, %c0_i32_0 : i32, i32
  }
  func.func @transform_5(%arg0: i32, %arg1: i32) -> (i32, i32) {
    %c0_i32 = arith.constant 0 : i32
    %c0_i32_0 = arith.constant 0 : i32
    %c0_i32_1 = arith.constant 0 : i32
    return %c0_i32, %c0_i32_0 : i32, i32
  }
  func.func @transform_6(%arg0: i32, %arg1: i32) -> (i32, i32) {
    %c0_i32 = arith.constant 0 : i32
    %c0_i32_0 = arith.constant 0 : i32
    %c0_i32_1 = arith.constant 0 : i32
    return %c0_i32, %c0_i32_0 : i32, i32
  }
  func.func @transform_7(%arg0: i32, %arg1: i32) -> (i32, i32, i32) {
    %c0_i32 = arith.constant 0 : i32
    %c0_i32_0 = arith.constant 0 : i32
    return %arg0, %c0_i32, %arg1 : i32, i32, i32
  }
}

</mosaic_0001>

<bundles_post_ra>
// kernel: tpu_custom_call.1
= control target key start
LH: loop header
LB: loop body
LE: loop exit
PB: predicated region body
PF: predicated region fallthrough
CT: control target
= control target key end

     0   :  { %s1151_s0 = inlined_call_operand.hbm [shape: f32[2,4,256], index: 0, kind: input, shape index: {}]   ;;  %s1152_s1 = inlined_call_operand.hbm [shape: f32[2,4,256], index: 1, kind: input, shape index: {}]   ;;  %s1153_s2 = inlined_call_operand.vmem [shape: f32[4,4], index: 2, kind: input, shape index: {}]   ;;  %s1154_s3 = inlined_call_operand.vmem [shape: f32[4,4], index: 3, kind: input, shape index: {}]   ;;  %s1155_s4 = inlined_call_operand.vmem [shape: f32[4,1], index: 4, kind: input, shape index: {}]   ;;  %s1156_s5 = inlined_call_operand.vmem [shape: f32[4,1], index: 5, kind: input, shape index: {}]   ;;  %s1157_s6 = inlined_call_operand.<no memory space> [shape: f32[1,1], index: 6, kind: input, shape index: {}]   ;;  %s1158_s7 = inlined_call_operand.hbm [shape: f32[2,4,256], index: 7, kind: output, shape index: {}]  }
   0x1   :  { %v12_v0 = vstv %s1157_s6 }
   0x2   :  { %13 = vst [vmem:[#allocation2] sm:$0x1] %v12_v0 }
   0x3   :  { %14 = vsyncpa [#allocation4], 0 }
   0x4   :  { %16 = vsyncpa [#allocation4 + $0x1], 0 }
   0x5   :  { %17 = vsyncpa [#allocation7], 0 }
   0x6   :  { %19 = vsyncpa [#allocation7 + $0x1], 0 }
   0x7   :  { %20 = vsyncpa [#allocation5], 0 }
   0x8   :  { %22 = vsyncpa [#allocation5 + $0x1], 0  ;;  %s989_s26 = smov 0   ;;  %s991_s27 = smov 0  }
   0x9   :  { %s993_s28 = smov 0   ;;  %s995_s29 = smov 0  }
   0xa   :  { %s997_s30 = smov 0   ;;  %s999_s8 = smov 0  }
   0xb LB: > { %1161 = sst [smem:[#allocation12_spill]] %s939_s30  ;;  %s687_s6 = sadd.s32 4294967295, %s943_s8   ;;  %s943_s8 = sphi %s999_s8, %s28_s8   ;;  %s939_s30 = sphi %s997_s30, %s1172_s30   ;;  %s935_s29 = sphi %s995_s29, %s1171_s29   ;;  %s931_s28 = sphi %s993_s28, %s1175_s28   ;;  %s927_s27 = sphi %s991_s27, %s1174_s27   ;;  %s923_s26 = sphi %s989_s26, %s1173_s26  }
   0xc   : > { %s688_s9 = sadd.s32 4294967294, %s943_s8   ;;  %s40_s10 = sadd.s32 1, %s939_s30 }
   0xd   : > { %s49_s11 = sadd.s32 1, %s931_s28  ;;  %p42_p0 = scmp.ge.s32.totalorder %s40_s10, 2 }
   0xe   : > { %p56_p1 = scmp.ne.s32.totalorder %s931_s28, %s927_s27  ;;  %p57_p2 = scmp.eq.s32.totalorder %s943_s8, 0 }
   0xf   : > { %p62_p3 = scmp.ne.s32.totalorder %s927_s27, %s923_s26  ;;  %s1177_s10 = smov (%p42_p0, %s40_s10), 0 }
  0x10   : > { %1162 = sst [smem:[#allocation13_spill]] %s1177_s10  ;;  %p1030_p4 = por %p57_p2, %p56_p1 }
  0x11   : > { %p63_p5 = scmp.eq.s32.totalorder %s687_s6, 0  ;;  %s44_s13 = ssub.s32 %s939_s30, %s1177_s10 }
  0x12   : > { %p221_p6 = scmp.eq.s32.totalorder %s687_s6, 1  ;;  %p47_p7 = scmp.eq.s32.totalorder %s44_s13, 0 }
  0x13   : > { %p1036_p8 = por %p63_p5, %p62_p3  ;;  %p227_p10 = scmp.eq.s32.totalorder %s688_s9, 1 }
  0x14   : > { %p1040_p9 = por %p221_p6, %p56_p1  ;;  %p690_p12 = scmp.ge.s32.totalorder %s943_s8, 2 }
  0x15   : > { %s1045_s16 = scalar_select %p47_p7, %s931_s28, %s49_s11  }
  0x16   : > { %p1047_p11 = por %p227_p10, %p62_p3  ;;  %p736_p13 = scmp.lt.s32.totalorder %s943_s8, 2 }
  0x17   : > { %1166 = sst [smem:[#allocation14_spill]] %s1045_s16  ;;  %s262_s18 = sand.u32 1, %s931_s28  }
  0x18   : > { %s691_s19 = sshll.u32 %s262_s18, 3  ;;  %s716_s20 = sshll.u32 %s939_s30, 3 }
  0x19   : > { %s273_s23 = scalar_lea.hbm %s1151_s0, %s716_s20  ;;  %s266_s24 = scalar_lea.vmem [#allocation3], %s691_s19 }
  0x1a   : > { %s277_s25 = sshll.u32 %s266_s24, 4  ;;  %s275_s6 = sshll.u32 %s273_s23, 4  ;;  %s278_s25 = int_to_ptr.vmem [resolvable:$true] %s277_s25  ;;  %s276_s6 = int_to_ptr.hbm [resolvable:$true] %s275_s6 }
  0x1b   : > { %p726_p0 = pnand %p736_p13, %p1030_p4  ;;  %p697_p1 = scmp.ge.s32.totalorder %s943_s8, 1 }
  0x1c   : > { %p304_p2 = scmp.lt.s32.totalorder %s943_s8, 3  ;;  %s263_s9 = scalar_lea.sflag [#allocation4], %s262_s18 }
  0x1d   : > { %728 = dma.hbm_to_vmem [thread:$0]  (!%p726_p0), %s276_s6, 128, %s278_s25, %s263_s9  }
  0x1e   : > { %p305_p3 = pnand %p697_p1, %p304_p2  ;;  %s295_s10 = scalar_lea.hbm %s1152_s1, %s716_s20 }
  0x1f   : > { %s288_s30 = scalar_lea.vmem [#allocation6], %s691_s19  ;;  %s297_s21 = sshll.u32 %s295_s10, 4  ;;  %s298_s21 = int_to_ptr.hbm [resolvable:$true] %s297_s21 }
  0x20   : > { %s299_s16 = sshll.u32 %s288_s30, 4  ;;  %s285_s22 = scalar_lea.sflag [#allocation7], %s262_s18  ;;  %s300_s16 = int_to_ptr.vmem [resolvable:$true] %s299_s16 }
  0x21   : > { %731 = dma.hbm_to_vmem [thread:$0]  (!%p726_p0), %s298_s21, 128, %s300_s16, %s285_s22  }
  0x22   : > { %308 = sbr.rel (%p305_p3) target bundleno = 252 (0xfc), region = 48  ;;  %s1066_s12 = sand.u32 (!%p305_p3), 1, %s927_s27  }
  0x23   : > { %s1069_s23 = sshll.u32 (!%p305_p3), %s1066_s12, 3  ;;  %s311_s24 = scalar_lea.sflag (!%p305_p3), [#allocation4], %s1066_s12 }
  0x24   : > { %s314_s25 = scalar_lea.vmem (!%p305_p3), [#allocation3], %s1069_s23 }
  0x27   : > { %910 = dma.done.wait (%p1036_p8), %s311_s24, 128  }
  0x28   : > { %912 = vsyncadd (%p1036_p8), %s311_s24, 4294967168  ;;  %s321_s30 = scalar_lea.sflag [#allocation7], %s1066_s12  ;;  %s324_s10 = scalar_lea.vmem [#allocation6], %s1069_s23 }
  0x29   : > { %914 = dma.done.wait (%p1036_p8), %s321_s30, 128  }
  0x2a   : > { %916 = vsyncadd (%p1036_p8), %s321_s30, 4294967168  ;;  %v945_v1 = vmov 0   ;;  %v367_v2 = vld [vmem:[%s324_s10] sm:$0xff]  ;;  %v1086_v5 = vld [vmem:[%s314_s25] sm:$0xff]  ;;  %vm376_vm0 = vcmask 1043456   ;;  %vm372_vm1 = vcmask 31744  }
  0x2b   : > { %787 = vset.pattern.permute.xlu0 %v945_v1  ;;  %788 = vset.pattern.permute.xlu1 %v945_v1  ;;  %369 = vst [vmem:[#allocation1] ss:$2 sm:$0xff] %v367_v2  ;;  %v472_v3 = vld [vmem:[%s1155_s4] sm:$0xf]  ;;  %v504_v4 = vld [vmem:[#allocation2] sm:$0x1] }
  0x2c   : > { %475 = vperm.xlu0 %787, %v472_v3   ;;  %507 = vperm.xlu1 %788, %v504_v4   ;;  %v366_v6 = vld [vmem:[%s1154_s3] sm:$0xf]  ;;  %s718_s13 = sshll.u32 %s935_s29, 3  ;;  %s360_s29 = scalar_lea.vmem [#allocation8], %s1069_s23 }
  0x2d   : > { %v482_v7 = vld [vmem:[%s1156_s5] sm:$0xf]  ;;  %s572_s24 = scalar_lea.hbm %s1158_s7, %s718_s13  ;;  %s574_s25 = sshll.u32 %s360_s29, 4  ;;  %s575_s25 = int_to_ptr.vmem [resolvable:$true] %s574_s25 }
  0x2e   : > { %v364_v10 = vld [vmem:[%s1153_s2] sm:$0xf]  ;;  %s576_s30 = sshll.u32 %s572_s24, 4  ;;  %s559_s10 = scalar_lea.sflag [#allocation5], %s1066_s12  ;;  %s577_s30 = int_to_ptr.hbm [resolvable:$true] %s576_s30 }
  0x2f   : > { %s871_s16 = sshra.s32 %s577_s30, 4  ;;  %s877_s20 = scalar_lea.hbm %s1158_s7, 16  ;;  %s872_s16 = int_to_ptr.hbm [resolvable:$true] %s871_s16 }
  0x30   : > { %s873_s18 = scalar_lea.hbm %s872_s16, 8  ;;  %p878_p7 = scmp.lt.s32.totalorder %s872_s16, %s1158_s7 }
  0x31   : > { %p874_p4 = scmp.ne.s32.totalorder %s872_s16, %s873_s18  ;;  %p879_p8 = scmp.lt.s32.totalorder %s877_s20, %s873_s18 }
  0x32   : > { %v370_v8 = vld.sshfl [vmem:[#allocation1] sm:$0xff pattern:$0x75316420]  ;;  %v371_v9 = vld.sshfl [vmem:[#allocation1 + $0x8] sm:$0xff pattern:$0x75316420] }
  0x33   : > { %422 = vst [vmem:[#allocation1] ss:$2 sm:$0xff] %v1086_v5  ;;  %701 = vmatpush.msk.msra.mxu0 %vm376_vm0, %v370_v8  ;;  %703 = vmatpush.msk.msra.mxu1 %vm376_vm0, %v371_v9  ;;  %p875_p5 = pnand %p874_p4, %p1040_p9  ;;  %p880_p10 = por %p879_p8, %p878_p7 }
  0x34   : > { %702 = vmatmul.msk.f32.vlgmr.msra.gmra.mxu0 %vm372_vm1, %v366_v6  ;;  %704 = vmatmul.msk.f32.vlgmr.msra.gmra.mxu1 %vm372_vm1, %v366_v6 }
  0x35   : > { %485 = vperm.xlu0 %787, %v482_v7   ;;  %p876_p6 = pneg %p875_p5 }
  0x37   : > { %p881_p13 = pnand %p880_p10, %p876_p6 }
  0x3a   : > { %v423_v11 = vld.sshfl [vmem:[#allocation1] sm:$0xff pattern:$0x75316420]  ;;  %v424_v12 = vld.sshfl [vmem:[#allocation1 + $0x8] sm:$0xff pattern:$0x75316420] }
  0x3b   : > { %705 = vmatpush.msk.msra.mxu2 %vm376_vm0, %v423_v11  ;;  %707 = vmatpush.msk.msra.mxu3 %vm376_vm0, %v424_v12 }
  0x3c   : > { %706 = vmatmul.msk.f32.vlgmr.msra.gmra.mxu2 %vm372_vm1, %v364_v10  ;;  %708 = vmatmul.msk.f32.vlgmr.msra.gmra.mxu3 %vm372_vm1, %v364_v10 }
  0x9e   : > { %v476_v13 = vpop.permute.xlu0 %475  ;;  %v508_v35 = vpop.permute.xlu1 %507 }
  0x9f   : > { %v510_v40 = vperm.slane %v508_v35, 0 }
  0xa7   : > { %v486_v24 = vpop.permute.xlu0 %485 }
  0xb1   : > { %v398_v14 = vpop.f32.mrf.mxu0  ;;  %v418_v15 = vpop.f32.mrf.mxu1 }
  0xbf   : > { %v449_v16 = vpop.f32.mrf.mxu2  ;;  %v469_v17 = vpop.f32.mrf.mxu3 }
  0xc0   : > { %v450_v18 = vadd.f32 %v449_v16, %v398_v14  ;;  %v470_v19 = vadd.f32 %v469_v17, %v418_v15 }
  0xc2   : > { %v478_v20 = vadd.f32 %v476_v13, %v450_v18  ;;  %v479_v21 = vadd.f32 %v476_v13, %v470_v19 }
  0xc4   : > { %v480_v22 = vmax.f32 %v478_v20, 0.0  ;;  %v481_v23 = vmax.f32 %v479_v21, 0.0 }
  0xc6   : > { %v488_v25 = vmul.f32 %v486_v24, %v480_v22  ;;  %v489_v26 = vmul.f32 %v486_v24, %v481_v23 }
  0xc8   : > { %v490_v27 = vsel %vm376_vm0, %v488_v25, 0.0  ;;  %v497_v28 = vsel %vm376_vm0, %v489_v26, 0.0 }
  0xc9   : > { %v491_v29 = vrot.slane %v490_v27, 4  ;;  %v498_v30 = vrot.slane %v497_v28, 4 }
  0xcb   : > { %v492_v31 = vadd.f32 %v491_v29, %v490_v27  ;;  %v499_v32 = vadd.f32 %v498_v30, %v497_v28 }
  0xcd   : > { %v493_v33 = vrot.slane %v492_v31, 2  ;;  %v500_v34 = vrot.slane %v499_v32, 2 }
  0xcf   : > { %v494_v36 = vadd.f32 %v493_v33, %v492_v31  ;;  %v501_v37 = vadd.f32 %v500_v34, %v499_v32 }
  0xd1   : > { %v495_v38 = vrot.slane %v494_v36, 1  ;;  %v502_v39 = vrot.slane %v501_v37, 1 }
  0xd3   : > { %v496_v41 = vadd.f32 %v495_v38, %v494_v36  ;;  %v503_v42 = vadd.f32 %v502_v39, %v501_v37 }
  0xd5   : > { %v511_v43 = vadd.f32 %v510_v40, %v496_v41  ;;  %v512_v44 = vadd.f32 %v510_v40, %v503_v42 }
  0xd7   : > { %v709_v45 = vmul.f32 -1.442695, %v511_v43  ;;  %v710_v46 = vmul.f32 -1.442695, %v512_v44 }
  0xd9   : > { %789 = vpow2.f32 %v709_v45 }
  0xda   : > { %791 = vpow2.f32 %v710_v46 }
  0xdf   : > { %v790_v47 = vpop.eup %789 }
  0xe0   : > { %v792_v48 = vpop.eup %791  ;;  %v519_v49 = vadd.f32 1.0, %v790_v47 }
  0xe1   : > { %v520_v50 = vadd.f32 1.0, %v792_v48 }
  0xe2   : > { %793 = vrcp.f32 %v519_v49  ;;  %vm526_vm4 = vweird.f32 %v519_v49  ;;  %v532_v61 = vand.u32 2147483648, %v519_v49  ;;  %v530_v1 = vand.u32 2147483647, %v519_v49 }
  0xe3   : > { %795 = vrcp.f32 %v520_v50  ;;  %v547_v58 = vand.u32 2147483648, %v520_v50  ;;  %v545_v60 = vand.u32 2147483647, %v520_v50  ;;  %vm541_vm5 = vweird.f32 %v520_v50 }
  0xe4   : > { %v533_v6 = vor.u32 1.1754944e-38, %v532_v61  ;;  %vm531_vm9 = vcmp.eq.f32.partialorder %v530_v1, 8.507059e+37 }
  0xe5   : > { %v548_v2 = vor.u32 1.1754944e-38, %v547_v58  ;;  %vm546_vm8 = vcmp.eq.f32.partialorder %v545_v60, 8.507059e+37 }
  0xe8   : > { %v794_v51 = vpop.eup %793 }
  0xe9   : > { %v796_v52 = vpop.eup %795  ;;  %v522_v53 = vmul.f32 %v794_v51, %v519_v49  ;;  %vm527_vm2 = vweird.f32 %v794_v51 }
  0xea   : > { %v537_v54 = vmul.f32 %v796_v52, %v520_v50  ;;  %vm542_vm3 = vweird.f32 %v796_v52  ;;  %vm1105_vm6 = vmor %vm526_vm4, %vm527_vm2 }
  0xeb   : > { %v523_v55 = vsub.f32 1.0, %v522_v53  ;;  %vm543_vm7 = vmor %vm541_vm5, %vm542_vm3 }
  0xec   : > { %v538_v56 = vsub.f32 1.0, %v537_v54 }
  0xed   : > { %v524_v57 = vmul.f32 %v794_v51, %v523_v55 }
  0xee   : > { %v539_v59 = vmul.f32 %v796_v52, %v538_v56 }
  0xef   : > { %v525_v62 = vadd.f32 %v794_v51, %v524_v57 }
  0xf0   : > { %v540_v63 = vadd.f32 %v796_v52, %v539_v59 }
  0xf1   : > { %v529_v3 = vsel %vm1105_vm6, %v794_v51, %v525_v62 }
  0xf2   : > { %v544_v4 = vsel %vm543_vm7, %v796_v52, %v540_v63  ;;  %v534_v9 = vsel %vm531_vm9, %v533_v6, %v529_v3 }
  0xf3   : > { %v549_v7 = vsel %vm546_vm8, %v548_v2, %v544_v4 }
  0xf4   : > { %v553_v8 = vrot.slane %v549_v7, 4 }
  0xf6   : > { %v554_v10 = vsel %vm376_vm0, %v534_v9, %v553_v8 }
  0xf7   : > { %v556_v11 = vmul.f32 %v554_v10, %v1086_v5 }
  0xf9   : > { %557 = vst [vmem:[%s360_s29] sm:$0xff] %v556_v11 }
  0xfa   : > { %884 = shalt.err (!%p881_p13)
}
  0xfb   : > { %723 = dma.vmem_to_hbm [thread:$0]  (%p1040_p9), %s575_s25, 128, %s577_s30, %s559_s10  }
  0xfc PF: > { %s588_s12 = sand.u32 1, %s923_s26   ;;  %p733_p0 = pnand %p690_p12, %p1047_p11 }
  0xfd   : > { %s589_s9 = scalar_lea.sflag [#allocation5], %s588_s12 }
  0xfe   : > { %p734_p1 = pneg %p733_p0 }
 0x100   : > { %918 = dma.done.wait (%p734_p1), %s589_s9, 128  }
 0x101   : > { %920 = vsyncadd (%p734_p1), %s589_s9, 4294967168  ;;  %s28_s8 = sadd.s32 1, %s943_s8   ;;  %s1170_s11 = sld [smem:[#allocation14_spill]] }
 0x102   : > { %p25_p2 = scmp.ge.s32.totalorder %s28_s8, 4   ;;  %s1171_s29 = sld [smem:[#allocation12_spill]] }
 0x103   : > { %s1172_s30 = sld [smem:[#allocation13_spill]]  ;;  %s1173_s26 = smov %s927_s27 }
 0x104   : > { %s1174_s27 = smov %s931_s28  ;;  %27 = sbr.rel (!%p25_p2) target bundleno = 11 (0xb), region = 106 }
 0x107   : > { %s1175_s28 = smov %s1170_s11 }
 0x109   :  { %595 = vsyncpa [#allocation4], 1 }
 0x10a   :  { %597 = vsyncpa [#allocation4 + $0x1], 1 }
 0x10b   :  { %598 = vsyncpa [#allocation7], 1 }
 0x10c   :  { %600 = vsyncpa [#allocation7 + $0x1], 1 }
 0x10d   :  { %601 = vsyncpa [#allocation5], 1 }
 0x10e   :  { %603 = vsyncpa [#allocation5 + $0x1], 1 }

// kernel: tpu_custom_call.1
= control target key start
LH: loop header
LB: loop body
LE: loop exit
PB: predicated region body
PF: predicated region fallthrough
CT: control target
= control target key end

     0   :  { %s1151_s0 = inlined_call_operand.hbm [shape: f32[2,4,256], index: 0, kind: input, shape index: {}]   ;;  %s1152_s1 = inlined_call_operand.hbm [shape: f32[2,4,256], index: 1, kind: input, shape index: {}]   ;;  %s1153_s2 = inlined_call_operand.vmem [shape: f32[4,4], index: 2, kind: input, shape index: {}]   ;;  %s1154_s3 = inlined_call_operand.vmem [shape: f32[4,4], index: 3, kind: input, shape index: {}]   ;;  %s1155_s4 = inlined_call_operand.vmem [shape: f32[4,1], index: 4, kind: input, shape index: {}]   ;;  %s1156_s5 = inlined_call_operand.vmem [shape: f32[4,1], index: 5, kind: input, shape index: {}]   ;;  %s1157_s6 = inlined_call_operand.<no memory space> [shape: f32[1,1], index: 6, kind: input, shape index: {}]   ;;  %s1158_s7 = inlined_call_operand.hbm [shape: f32[2,4,256], index: 7, kind: output, shape index: {}]  }
   0x1   :  { %v12_v0 = vstv %s1157_s6 }
   0x2   :  { %13 = vst [vmem:[#allocation2] sm:$0x1] %v12_v0 }
   0x3   :  { %14 = vsyncpa [#allocation4], 0 }
   0x4   :  { %16 = vsyncpa [#allocation4 + $0x1], 0 }
   0x5   :  { %17 = vsyncpa [#allocation7], 0 }
   0x6   :  { %19 = vsyncpa [#allocation7 + $0x1], 0 }
   0x7   :  { %20 = vsyncpa [#allocation5], 0 }
   0x8   :  { %22 = vsyncpa [#allocation5 + $0x1], 0  ;;  %s989_s26 = smov 0   ;;  %s991_s27 = smov 0  }
   0x9   :  { %s993_s28 = smov 0   ;;  %s995_s29 = smov 0  }
   0xa   :  { %s997_s30 = smov 0   ;;  %s999_s8 = smov 0  }
   0xb LB: > { %1161 = sst [smem:[#allocation12_spill]] %s939_s30  ;;  %s687_s6 = sadd.s32 4294967295, %s943_s8   ;;  %s943_s8 = sphi %s999_s8, %s28_s8   ;;  %s939_s30 = sphi %s997_s30, %s1172_s30   ;;  %s935_s29 = sphi %s995_s29, %s1171_s29   ;;  %s931_s28 = sphi %s993_s28, %s1175_s28   ;;  %s927_s27 = sphi %s991_s27, %s1174_s27   ;;  %s923_s26 = sphi %s989_s26, %s1173_s26  }
   0xc   : > { %s688_s9 = sadd.s32 4294967294, %s943_s8   ;;  %s40_s10 = sadd.s32 1, %s939_s30 }
   0xd   : > { %s49_s11 = sadd.s32 1, %s931_s28  ;;  %p42_p0 = scmp.ge.s32.totalorder %s40_s10, 2 }
   0xe   : > { %p56_p1 = scmp.ne.s32.totalorder %s931_s28, %s927_s27  ;;  %p57_p2 = scmp.eq.s32.totalorder %s943_s8, 0 }
   0xf   : > { %p62_p3 = scmp.ne.s32.totalorder %s927_s27, %s923_s26  ;;  %s1177_s10 = smov (%p42_p0, %s40_s10), 0 }
  0x10   : > { %1162 = sst [smem:[#allocation13_spill]] %s1177_s10  ;;  %p1030_p4 = por %p57_p2, %p56_p1 }
  0x11   : > { %p63_p5 = scmp.eq.s32.totalorder %s687_s6, 0  ;;  %s44_s13 = ssub.s32 %s939_s30, %s1177_s10 }
  0x12   : > { %p221_p6 = scmp.eq.s32.totalorder %s687_s6, 1  ;;  %p47_p7 = scmp.eq.s32.totalorder %s44_s13, 0 }
  0x13   : > { %p1036_p8 = por %p63_p5, %p62_p3  ;;  %p227_p10 = scmp.eq.s32.totalorder %s688_s9, 1 }
  0x14   : > { %p1040_p9 = por %p221_p6, %p56_p1  ;;  %p690_p12 = scmp.ge.s32.totalorder %s943_s8, 2 }
  0x15   : > { %s1045_s16 = scalar_select %p47_p7, %s931_s28, %s49_s11  }
  0x16   : > { %p1047_p11 = por %p227_p10, %p62_p3  ;;  %p736_p13 = scmp.lt.s32.totalorder %s943_s8, 2 }
  0x17   : > { %1166 = sst [smem:[#allocation14_spill]] %s1045_s16  ;;  %s262_s18 = sand.u32 1, %s931_s28  }
  0x18   : > { %s691_s19 = sshll.u32 %s262_s18, 3  ;;  %s716_s20 = sshll.u32 %s939_s30, 3 }
  0x19   : > { %s273_s23 = scalar_lea.hbm %s1151_s0, %s716_s20  ;;  %s266_s24 = scalar_lea.vmem [#allocation3], %s691_s19 }
  0x1a   : > { %s277_s25 = sshll.u32 %s266_s24, 4  ;;  %s275_s6 = sshll.u32 %s273_s23, 4  ;;  %s278_s25 = int_to_ptr.vmem [resolvable:$true] %s277_s25  ;;  %s276_s6 = int_to_ptr.hbm [resolvable:$true] %s275_s6 }
  0x1b   : > { %p726_p0 = pnand %p736_p13, %p1030_p4  ;;  %p697_p1 = scmp.ge.s32.totalorder %s943_s8, 1 }
  0x1c   : > { %p304_p2 = scmp.lt.s32.totalorder %s943_s8, 3  ;;  %s263_s9 = scalar_lea.sflag [#allocation4], %s262_s18 }
  0x1d   : > { %728 = dma.hbm_to_vmem [thread:$0]  (!%p726_p0), %s276_s6, 128, %s278_s25, %s263_s9  }
  0x1e   : > { %p305_p3 = pnand %p697_p1, %p304_p2  ;;  %s295_s10 = scalar_lea.hbm %s1152_s1, %s716_s20 }
  0x1f   : > { %s288_s30 = scalar_lea.vmem [#allocation6], %s691_s19  ;;  %s297_s21 = sshll.u32 %s295_s10, 4  ;;  %s298_s21 = int_to_ptr.hbm [resolvable:$true] %s297_s21 }
  0x20   : > { %s299_s16 = sshll.u32 %s288_s30, 4  ;;  %s285_s22 = scalar_lea.sflag [#allocation7], %s262_s18  ;;  %s300_s16 = int_to_ptr.vmem [resolvable:$true] %s299_s16 }
  0x21   : > { %731 = dma.hbm_to_vmem [thread:$0]  (!%p726_p0), %s298_s21, 128, %s300_s16, %s285_s22  }
  0x22   : > { %308 = sbr.rel (%p305_p3) target bundleno = 252 (0xfc), region = 48  ;;  %s1066_s12 = sand.u32 (!%p305_p3), 1, %s927_s27  }
  0x23   : > { %s1069_s23 = sshll.u32 (!%p305_p3), %s1066_s12, 3  ;;  %s311_s24 = scalar_lea.sflag (!%p305_p3), [#allocation4], %s1066_s12 }
  0x24   : > { %s314_s25 = scalar_lea.vmem (!%p305_p3), [#allocation3], %s1069_s23 }
  0x27   : > { %910 = dma.done.wait (%p1036_p8), %s311_s24, 128  }
  0x28   : > { %912 = vsyncadd (%p1036_p8), %s311_s24, 4294967168  ;;  %s321_s30 = scalar_lea.sflag [#allocation7], %s1066_s12  ;;  %s324_s10 = scalar_lea.vmem [#allocation6], %s1069_s23 }
  0x29   : > { %914 = dma.done.wait (%p1036_p8), %s321_s30, 128  }
  0x2a   : > { %916 = vsyncadd (%p1036_p8), %s321_s30, 4294967168  ;;  %v945_v1 = vmov 0   ;;  %v367_v2 = vld [vmem:[%s324_s10] sm:$0xff]  ;;  %v1086_v5 = vld [vmem:[%s314_s25] sm:$0xff]  ;;  %vm376_vm0 = vcmask 1043456   ;;  %vm372_vm1 = vcmask 31744  }
  0x2b   : > { %787 = vset.pattern.permute.xlu0 %v945_v1  ;;  %788 = vset.pattern.permute.xlu1 %v945_v1  ;;  %369 = vst [vmem:[#allocation1] ss:$2 sm:$0xff] %v367_v2  ;;  %v472_v3 = vld [vmem:[%s1155_s4] sm:$0xf]  ;;  %v504_v4 = vld [vmem:[#allocation2] sm:$0x1] }
  0x2c   : > { %475 = vperm.xlu0 %787, %v472_v3   ;;  %507 = vperm.xlu1 %788, %v504_v4   ;;  %v366_v6 = vld [vmem:[%s1154_s3] sm:$0xf]  ;;  %s718_s13 = sshll.u32 %s935_s29, 3  ;;  %s360_s29 = scalar_lea.vmem [#allocation8], %s1069_s23 }
  0x2d   : > { %v482_v7 = vld [vmem:[%s1156_s5] sm:$0xf]  ;;  %s572_s24 = scalar_lea.hbm %s1158_s7, %s718_s13  ;;  %s574_s25 = sshll.u32 %s360_s29, 4  ;;  %s575_s25 = int_to_ptr.vmem [resolvable:$true] %s574_s25 }
  0x2e   : > { %v364_v10 = vld [vmem:[%s1153_s2] sm:$0xf]  ;;  %s576_s30 = sshll.u32 %s572_s24, 4  ;;  %s559_s10 = scalar_lea.sflag [#allocation5], %s1066_s12  ;;  %s577_s30 = int_to_ptr.hbm [resolvable:$true] %s576_s30 }
  0x2f   : > { %s871_s16 = sshra.s32 %s577_s30, 4  ;;  %s877_s20 = scalar_lea.hbm %s1158_s7, 16  ;;  %s872_s16 = int_to_ptr.hbm [resolvable:$true] %s871_s16 }
  0x30   : > { %s873_s18 = scalar_lea.hbm %s872_s16, 8  ;;  %p878_p7 = scmp.lt.s32.totalorder %s872_s16, %s1158_s7 }
  0x31   : > { %p874_p4 = scmp.ne.s32.totalorder %s872_s16, %s873_s18  ;;  %p879_p8 = scmp.lt.s32.totalorder %s877_s20, %s873_s18 }
  0x32   : > { %v370_v8 = vld.sshfl [vmem:[#allocation1] sm:$0xff pattern:$0x75316420]  ;;  %v371_v9 = vld.sshfl [vmem:[#allocation1 + $0x8] sm:$0xff pattern:$0x75316420] }
  0x33   : > { %422 = vst [vmem:[#allocation1] ss:$2 sm:$0xff] %v1086_v5  ;;  %701 = vmatpush.msk.msra.mxu0 %vm376_vm0, %v370_v8  ;;  %703 = vmatpush.msk.msra.mxu1 %vm376_vm0, %v371_v9  ;;  %p875_p5 = pnand %p874_p4, %p1040_p9  ;;  %p880_p10 = por %p879_p8, %p878_p7 }
  0x34   : > { %702 = vmatmul.msk.f32.vlgmr.msra.gmra.mxu0 %vm372_vm1, %v366_v6  ;;  %704 = vmatmul.msk.f32.vlgmr.msra.gmra.mxu1 %vm372_vm1, %v366_v6 }
  0x35   : > { %485 = vperm.xlu0 %787, %v482_v7   ;;  %p876_p6 = pneg %p875_p5 }
  0x37   : > { %p881_p13 = pnand %p880_p10, %p876_p6 }
  0x3a   : > { %v423_v11 = vld.sshfl [vmem:[#allocation1] sm:$0xff pattern:$0x75316420]  ;;  %v424_v12 = vld.sshfl [vmem:[#allocation1 + $0x8] sm:$0xff pattern:$0x75316420] }
  0x3b   : > { %705 = vmatpush.msk.msra.mxu2 %vm376_vm0, %v423_v11  ;;  %707 = vmatpush.msk.msra.mxu3 %vm376_vm0, %v424_v12 }
  0x3c   : > { %706 = vmatmul.msk.f32.vlgmr.msra.gmra.mxu2 %vm372_vm1, %v364_v10  ;;  %708 = vmatmul.msk.f32.vlgmr.msra.gmra.mxu3 %vm372_vm1, %v364_v10 }
  0x9e   : > { %v476_v13 = vpop.permute.xlu0 %475  ;;  %v508_v35 = vpop.permute.xlu1 %507 }
  0x9f   : > { %v510_v40 = vperm.slane %v508_v35, 0 }
  0xa7   : > { %v486_v24 = vpop.permute.xlu0 %485 }
  0xb1   : > { %v398_v14 = vpop.f32.mrf.mxu0  ;;  %v418_v15 = vpop.f32.mrf.mxu1 }
  0xbf   : > { %v449_v16 = vpop.f32.mrf.mxu2  ;;  %v469_v17 = vpop.f32.mrf.mxu3 }
  0xc0   : > { %v450_v18 = vadd.f32 %v449_v16, %v398_v14  ;;  %v470_v19 = vadd.f32 %v469_v17, %v418_v15 }
  0xc2   : > { %v478_v20 = vadd.f32 %v476_v13, %v450_v18  ;;  %v479_v21 = vadd.f32 %v476_v13, %v470_v19 }
  0xc4   : > { %v480_v22 = vmax.f32 %v478_v20, 0.0  ;;  %v481_v23 = vmax.f32 %v479_v21, 0.0 }
  0xc6   : > { %v488_v25 = vmul.f32 %v486_v24, %v480_v22  ;;  %v489_v26 = vmul.f32 %v486_v24, %v481_v23 }
  0xc8   : > { %v490_v27 = vsel %vm376_vm0, %v488_v25, 0.0  ;;  %v497_v28 = vsel %vm376_vm0, %v489_v26, 0.0 }
  0xc9   : > { %v491_v29 = vrot.slane %v490_v27, 4  ;;  %v498_v30 = vrot.slane %v497_v28, 4 }
  0xcb   : > { %v492_v31 = vadd.f32 %v491_v29, %v490_v27  ;;  %v499_v32 = vadd.f32 %v498_v30, %v497_v28 }
  0xcd   : > { %v493_v33 = vrot.slane %v492_v31, 2  ;;  %v500_v34 = vrot.slane %v499_v32, 2 }
  0xcf   : > { %v494_v36 = vadd.f32 %v493_v33, %v492_v31  ;;  %v501_v37 = vadd.f32 %v500_v34, %v499_v32 }
  0xd1   : > { %v495_v38 = vrot.slane %v494_v36, 1  ;;  %v502_v39 = vrot.slane %v501_v37, 1 }
  0xd3   : > { %v496_v41 = vadd.f32 %v495_v38, %v494_v36  ;;  %v503_v42 = vadd.f32 %v502_v39, %v501_v37 }
  0xd5   : > { %v511_v43 = vadd.f32 %v510_v40, %v496_v41  ;;  %v512_v44 = vadd.f32 %v510_v40, %v503_v42 }
  0xd7   : > { %v709_v45 = vmul.f32 -1.442695, %v511_v43  ;;  %v710_v46 = vmul.f32 -1.442695, %v512_v44 }
  0xd9   : > { %789 = vpow2.f32 %v709_v45 }
  0xda   : > { %791 = vpow2.f32 %v710_v46 }
  0xdf   : > { %v790_v47 = vpop.eup %789 }
  0xe0   : > { %v792_v48 = vpop.eup %791  ;;  %v519_v49 = vadd.f32 1.0, %v790_v47 }
  0xe1   : > { %v520_v50 = vadd.f32 1.0, %v792_v48 }
  0xe2   : > { %793 = vrcp.f32 %v519_v49  ;;  %vm526_vm4 = vweird.f32 %v519_v49  ;;  %v532_v61 = vand.u32 2147483648, %v519_v49  ;;  %v530_v1 = vand.u32 2147483647, %v519_v49 }
  0xe3   : > { %795 = vrcp.f32 %v520_v50  ;;  %v547_v58 = vand.u32 2147483648, %v520_v50  ;;  %v545_v60 = vand.u32 2147483647, %v520_v50  ;;  %vm541_vm5 = vweird.f32 %v520_v50 }
  0xe4   : > { %v533_v6 = vor.u32 1.1754944e-38, %v532_v61  ;;  %vm531_vm9 = vcmp.eq.f32.partialorder %v530_v1, 8.507059e+37 }
  0xe5   : > { %v548_v2 = vor.u32 1.1754944e-38, %v547_v58  ;;  %vm546_vm8 = vcmp.eq.f32.partialorder %v545_v60, 8.507059e+37 }
  0xe8   : > { %v794_v51 = vpop.eup %793 }
  0xe9   : > { %v796_v52 = vpop.eup %795  ;;  %v522_v53 = vmul.f32 %v794_v51, %v519_v49  ;;  %vm527_vm2 = vweird.f32 %v794_v51 }
  0xea   : > { %v537_v54 = vmul.f32 %v796_v52, %v520_v50  ;;  %vm542_vm3 = vweird.f32 %v796_v52  ;;  %vm1105_vm6 = vmor %vm526_vm4, %vm527_vm2 }
  0xeb   : > { %v523_v55 = vsub.f32 1.0, %v522_v53  ;;  %vm543_vm7 = vmor %vm541_vm5, %vm542_vm3 }
  0xec   : > { %v538_v56 = vsub.f32 1.0, %v537_v54 }
  0xed   : > { %v524_v57 = vmul.f32 %v794_v51, %v523_v55 }
  0xee   : > { %v539_v59 = vmul.f32 %v796_v52, %v538_v56 }
  0xef   : > { %v525_v62 = vadd.f32 %v794_v51, %v524_v57 }
  0xf0   : > { %v540_v63 = vadd.f32 %v796_v52, %v539_v59 }
  0xf1   : > { %v529_v3 = vsel %vm1105_vm6, %v794_v51, %v525_v62 }
  0xf2   : > { %v544_v4 = vsel %vm543_vm7, %v796_v52, %v540_v63  ;;  %v534_v9 = vsel %vm531_vm9, %v533_v6, %v529_v3 }
  0xf3   : > { %v549_v7 = vsel %vm546_vm8, %v548_v2, %v544_v4 }
  0xf4   : > { %v553_v8 = vrot.slane %v549_v7, 4 }
  0xf6   : > { %v554_v10 = vsel %vm376_vm0, %v534_v9, %v553_v8 }
  0xf7   : > { %v556_v11 = vmul.f32 %v554_v10, %v1086_v5 }
  0xf9   : > { %557 = vst [vmem:[%s360_s29] sm:$0xff] %v556_v11 }
  0xfa   : > { %884 = shalt.err (!%p881_p13)
}
  0xfb   : > { %723 = dma.vmem_to_hbm [thread:$0]  (%p1040_p9), %s575_s25, 128, %s577_s30, %s559_s10  }
  0xfc PF: > { %s588_s12 = sand.u32 1, %s923_s26   ;;  %p733_p0 = pnand %p690_p12, %p1047_p11 }
  0xfd   : > { %s589_s9 = scalar_lea.sflag [#allocation5], %s588_s12 }
  0xfe   : > { %p734_p1 = pneg %p733_p0 }
 0x100   : > { %918 = dma.done.wait (%p734_p1), %s589_s9, 128  }
 0x101   : > { %920 = vsyncadd (%p734_p1), %s589_s9, 4294967168  ;;  %s28_s8 = sadd.s32 1, %s943_s8   ;;  %s1170_s11 = sld [smem:[#allocation14_spill]] }
 0x102   : > { %p25_p2 = scmp.ge.s32.totalorder %s28_s8, 4   ;;  %s1171_s29 = sld [smem:[#allocation12_spill]] }
 0x103   : > { %s1172_s30 = sld [smem:[#allocation13_spill]]  ;;  %s1173_s26 = smov %s927_s27 }
 0x104   : > { %s1174_s27 = smov %s931_s28  ;;  %27 = sbr.rel (!%p25_p2) target bundleno = 11 (0xb), region = 106 }
 0x107   : > { %s1175_s28 = smov %s1170_s11 }
 0x109   :  { %595 = vsyncpa [#allocation4], 1 }
 0x10a   :  { %597 = vsyncpa [#allocation4 + $0x1], 1 }
 0x10b   :  { %598 = vsyncpa [#allocation7], 1 }
 0x10c   :  { %600 = vsyncpa [#allocation7 + $0x1], 1 }
 0x10d   :  { %601 = vsyncpa [#allocation5], 1 }
 0x10e   :  { %603 = vsyncpa [#allocation5 + $0x1], 1 }

</bundles_post_ra>
